<compile_context>
chip_gen: v7x
topology: tpu7x:2x2x1
jax: 0.10.0
libtpu: 0.0.40
codegen_flags: <defaults>
</compile_context>

<pallas_src>
import jax
import jax.numpy as jnp
import numpy as np
from jax.experimental import pallas as pl
from jax.experimental.pallas import tpu as pltpu

_LANE = 128


def _round_up(n, m):
    return ((n + m - 1) // m) * m


# ---------------------------------------------------------------------------
# Kernel
# ---------------------------------------------------------------------------
def _a2c_rnn_rollout_kernel(h0_ref, x_ref, wg_ref, bg_ref, wav_ref, bav_ref,
                            out_ref, hseq_ref, h_scr):
    """One GRU step per grid iteration t; h carried in VMEM scratch."""
    Hp = h_scr.shape[1]

    # Load the initial hidden state into the resident scratch once.
    @pl.when(pl.program_id(0) == 0)
    def _():
        h_scr[...] = h0_ref[...]

    x = x_ref[0]                      # [B, Ip]  (lane-padded input)
    h = h_scr[...]                    # [B, Hp]  (lane-padded hidden)

    # Single fused gate matmul: [B, Ip+Hp] @ [Ip+Hp, 4*Hp].
    xh = jnp.concatenate([x, h], axis=1)
    g = jnp.dot(xh, wg_ref[...],
                preferred_element_type=jnp.float32) + bg_ref[...]

    # Gate blocks are 128-lane aligned -> whole-vreg slices.
    r = jax.nn.sigmoid(g[:, 0:Hp])                      # reset
    z = jax.nn.sigmoid(g[:, Hp:2 * Hp])                 # update
    n = jnp.tanh(g[:, 2 * Hp:3 * Hp] + r * g[:, 3 * Hp:4 * Hp])
    h_new = (1.0 - z) * n + z * h                       # [B, Hp]

    h_scr[...] = h_new
    hseq_ref[0] = h_new.astype(hseq_ref.dtype)

    # Fused action + value head: one lane-dense [B, Ap] slab.
    out = jnp.dot(h_new, wav_ref[...],
                  preferred_element_type=jnp.float32) + bav_ref[...]
    out_ref[0] = out.astype(out_ref.dtype)


# ---------------------------------------------------------------------------
# Parameters (torch-layout) and one-time packing into the fused/padded layout
# ---------------------------------------------------------------------------
def init_a2c_rnn_params(key, input_size, hidden_size, action_size):
    """torch-layout parameters (same shapes / fan-in scaling as the module)."""
    ks = jax.random.split(key, 8)
    k = 1.0 / np.sqrt(hidden_size)

    def u(kk, shape):
        return jax.random.uniform(kk, shape, jnp.float32, -k, k)

    return {
        "w_ih": u(ks[0], (3 * hidden_size, input_size)),   # GRUCell weight_ih
        "w_hh": u(ks[1], (3 * hidden_size, hidden_size)),  # GRUCell weight_hh
        "b_ih": u(ks[2], (3 * hidden_size,)),
        "b_hh": u(ks[3], (3 * hidden_size,)),
        "w_a":  u(ks[4], (action_size, hidden_size)),      # action_arm
        "b_a":  u(ks[5], (action_size,)),
        "w_v":  u(ks[6], (1, hidden_size)),                # value_arm
        "b_v":  u(ks[7], (1,)),
    }


def pack_a2c_rnn_params(params):
    """One-time wrapper-side fusion + 128-lane padding of the weights."""
    w_ih, w_hh = params["w_ih"], params["w_hh"]
    b_ih, b_hh = params["b_ih"], params["b_hh"]
    w_a, b_a = params["w_a"], params["b_a"]
    w_v, b_v = params["w_v"], params["b_v"]

    H = w_hh.shape[1]
    I = w_ih.shape[1]
    A = w_a.shape[0]
    Hp = _round_up(H, _LANE)
    Ip = _round_up(I, _LANE)
    Ap = _round_up(A + 1, _LANE)

    # torch GRUCell gate order: (r, z, n) stacked along dim 0.
    wih_r, wih_z, wih_n = w_ih[:H], w_ih[H:2 * H], w_ih[2 * H:]
    whh_r, whh_z, whh_n = w_hh[:H], w_hh[H:2 * H], w_hh[2 * H:]

    # Fused gate weight: rows [0:I] = x contribution, rows [Ip:Ip+H] = h.
    # Gate column blocks (each Hp wide): [ r(x+h), z(x+h), i_n, h_n ].
    w_gate = jnp.zeros((Ip + Hp, 4 * Hp), jnp.float32)
    w_gate = w_gate.at[:I, 0:H].set(wih_r.T)
    w_gate = w_gate.at[:I, Hp:Hp + H].set(wih_z.T)
    w_gate = w_gate.at[:I, 2 * Hp:2 * Hp + H].set(wih_n.T)
    w_gate = w_gate.at[Ip:Ip + H, 0:H].set(whh_r.T)
    w_gate = w_gate.at[Ip:Ip + H, Hp:Hp + H].set(whh_z.T)
    w_gate = w_gate.at[Ip:Ip + H, 3 * Hp:3 * Hp + H].set(whh_n.T)

    b_gate = jnp.zeros((1, 4 * Hp), jnp.float32)
    b_gate = b_gate.at[0, 0:H].set(b_ih[:H] + b_hh[:H])
    b_gate = b_gate.at[0, Hp:Hp + H].set(b_ih[H:2 * H] + b_hh[H:2 * H])
    b_gate = b_gate.at[0, 2 * Hp:2 * Hp + H].set(b_ih[2 * H:])
    b_gate = b_gate.at[0, 3 * Hp:3 * Hp + H].set(b_hh[2 * H:])

    # Fused action+value head: columns [0:A] = logits, column A = value.
    w_av = jnp.zeros((Hp, Ap), jnp.float32)
    w_av = w_av.at[:H, :A].set(w_a.T)
    w_av = w_av.at[:H, A:A + 1].set(w_v.T)
    b_av = jnp.zeros((1, Ap), jnp.float32)
    b_av = b_av.at[0, :A].set(b_a)
    b_av = b_av.at[0, A].set(b_v[0])

    return {
        "w_gate": w_gate, "b_gate": b_gate, "w_av": w_av, "b_av": b_av,
        "dims": {"I": I, "H": H, "A": A, "Ip": Ip, "Hp": Hp, "Ap": Ap},
    }


# ---------------------------------------------------------------------------
# Wrappers
# ---------------------------------------------------------------------------
def a2c_rnn_rollout(x_seq, h0, packed):
    """Runs T sequential A2CRNN forward steps in a single pallas_call.

    Args:
      x_seq: [T, n_envs, input_size] float32
      h0:    [n_envs, hidden_size] float32 initial hidden, or None (zeros,
             matching torch.nn.GRUCell's default).
      packed: dict from pack_a2c_rnn_params.

    Returns:
      (action_logits [T, n_envs, action_size],
       state_values  [T, n_envs],
       hidden_states [T, n_envs, hidden_size])
    """
    d = packed["dims"]
    I, H, A = d["I"], d["H"], d["A"]
    Ip, Hp, Ap = d["Ip"], d["Hp"], d["Ap"]
    T, B, _ = x_seq.shape

    # Lane-pad input and initial hidden (padded lanes stay zero in-kernel).
    x_pad = jnp.zeros((T, B, Ip), jnp.float32).at[:, :, :I].set(x_seq)
    h0_pad = jnp.zeros((B, Hp), jnp.float32)
    if h0 is not None:
        h0_pad = h0_pad.at[:, :H].set(h0.astype(jnp.float32))

    out_av, h_seq = pl.pallas_call(
        _a2c_rnn_rollout_kernel,
        out_shape=(
            jax.ShapeDtypeStruct((T, B, Ap), jnp.float32),
            jax.ShapeDtypeStruct((T, B, Hp), jnp.float32),
        ),
        grid_spec=pltpu.PrefetchScalarGridSpec(
            num_scalar_prefetch=0,
            grid=(T,),
            in_specs=[
                pl.BlockSpec((B, Hp), lambda t: (0, 0)),            # h0
                pl.BlockSpec((1, B, Ip), lambda t: (t, 0, 0)),      # x_t
                pl.BlockSpec((Ip + Hp, 4 * Hp), lambda t: (0, 0)),  # W_gate
                pl.BlockSpec((1, 4 * Hp), lambda t: (0, 0)),        # b_gate
                pl.BlockSpec((Hp, Ap), lambda t: (0, 0)),           # W_av
                pl.BlockSpec((1, Ap), lambda t: (0, 0)),            # b_av
            ],
            out_specs=[
                pl.BlockSpec((1, B, Ap), lambda t: (t, 0, 0)),      # logits|value
                pl.BlockSpec((1, B, Hp), lambda t: (t, 0, 0)),      # hidden seq
            ],
            scratch_shapes=[pltpu.VMEM((B, Hp), jnp.float32)],      # resident h
        ),
        compiler_params=pltpu.CompilerParams(
            dimension_semantics=("arbitrary",)),
    )(h0_pad, x_pad, packed["w_gate"], packed["b_gate"],
      packed["w_av"], packed["b_av"])

    logits = out_av[:, :, :A]
    values = out_av[:, :, A]
    hiddens = h_seq[:, :, :H]
    return logits, values, hiddens


def a2c_rnn_forward(x, h, packed):
    """Single step (matches the torch module's forward signature/semantics)."""
    logits, values, hiddens = a2c_rnn_rollout(x[None], h, packed)
    return logits[0], values[0], hiddens[0]


# ---------------------------------------------------------------------------
# Pure-JAX reference (mirrors torch.nn.GRUCell + the two Linear heads)
# ---------------------------------------------------------------------------
def _reference_rollout(x_seq, h0, params):
    H = params["w_hh"].shape[1]

    def step(h, x):
        gi = x @ params["w_ih"].T + params["b_ih"]
        gh = h @ params["w_hh"].T + params["b_hh"]
        r = jax.nn.sigmoid(gi[:, :H] + gh[:, :H])
        z = jax.nn.sigmoid(gi[:, H:2 * H] + gh[:, H:2 * H])
        n = jnp.tanh(gi[:, 2 * H:] + r * gh[:, 2 * H:])
        h_new = (1.0 - z) * n + z * h
        logits = h_new @ params["w_a"].T + params["b_a"]
        value = (h_new @ params["w_v"].T + params["b_v"])[:, 0]
        return h_new, (logits, value, h_new)

    _, (logits, values, h_seq) = jax.lax.scan(step, h0, x_seq)
    return logits, values, h_seq


# ---------------------------------------------------------------------------
if __name__ == "__main__":
    T, n_envs, input_size, hidden_size, action_size = 8, 8, 16, 32, 4

    key = jax.random.PRNGKey(0)
    k_params, k_x, k_h = jax.random.split(key, 3)

    params = init_a2c_rnn_params(k_params, input_size, hidden_size, action_size)
    packed = pack_a2c_rnn_params(params)

    x_seq = jax.random.normal(k_x, (T, n_envs, input_size), jnp.float32)
    h0 = jax.random.normal(k_h, (n_envs, hidden_size), jnp.float32)

    # Rollout starting from no hidden state (GRUCell defaults to zeros).
    logits0, values0, hidden0 = a2c_rnn_rollout(x_seq, None, packed)
    # Rollout with an explicit initial hidden state.
    logits1, values1, hidden1 = a2c_rnn_rollout(x_seq, h0, packed)
    # Single step (module-style forward).
    sl, sv, sh = a2c_rnn_forward(x_seq[0], h0, packed)
    jax.block_until_ready((logits0, values0, hidden0,
                           logits1, values1, hidden1, sl, sv, sh))

    # Correctness vs pure-JAX reference.
    z0 = jnp.zeros((n_envs, hidden_size), jnp.float32)
    ref_l0, ref_v0, ref_h0 = _reference_rollout(x_seq, z0, params)
    ref_l1, ref_v1, ref_h1 = _reference_rollout(x_seq, h0, params)

    tol = dict(atol=1e-3, rtol=1e-3)
    ok = (np.allclose(logits0, ref_l0, **tol) and
          np.allclose(values0, ref_v0, **tol) and
          np.allclose(hidden0, ref_h0, **tol) and
          np.allclose(logits1, ref_l1, **tol) and
          np.allclose(values1, ref_v1, **tol) and
          np.allclose(hidden1, ref_h1, **tol) and
          np.allclose(sl, ref_l1[0], **tol) and
          np.allclose(sv, ref_v1[0], **tol) and
          np.allclose(sh, ref_h1[0], **tol))
    assert ok, "Pallas kernel output mismatch vs reference"
    assert logits1.shape == (T, n_envs, action_size)
    assert values1.shape == (T, n_envs)
    assert hidden1.shape == (T, n_envs, hidden_size)
    assert sl.shape == (n_envs, action_size) and sv.shape == (n_envs,)

    print("KERNEL_OK")
</pallas_src>

<mosaic_0001>
module attributes {stable_mosaic.version = 11 : i64} {
  func.func @_a2c_rnn_rollout_kernel(%arg0: i32, %arg1: memref<8x128xf32, #tpu.memory_space<vmem>>, %arg2: memref<1x8x128xf32, #tpu.memory_space<vmem>>, %arg3: memref<256x512xf32, #tpu.memory_space<vmem>>, %arg4: memref<1x512xf32, #tpu.memory_space<vmem>>, %arg5: memref<128x128xf32, #tpu.memory_space<vmem>>, %arg6: memref<1x128xf32, #tpu.memory_space<vmem>>, %arg7: memref<1x8x128xf32, #tpu.memory_space<vmem>>, %arg8: memref<1x8x128xf32, #tpu.memory_space<vmem>>, %arg9: memref<8x128xf32, #tpu.memory_space<vmem>>) attributes {dimension_semantics = [#tpu.dimension_semantics<arbitrary>], iteration_bounds = array<i64: 8>, scalar_prefetch = 0 : i64, scratch_operands = 1 : i64, tpu.core_type = #tpu.core_type<tc>, window_params = [{pipeline_mode = #tpu.pipeline_mode<synchronous>, transform_indices = @transform_0, window_bounds = array<i64: 8, 128>}, {transform_indices = @transform_1, window_bounds = array<i64: 1, 8, 128>}, {pipeline_mode = #tpu.pipeline_mode<synchronous>, transform_indices = @transform_2, window_bounds = array<i64: 256, 512>}, {pipeline_mode = #tpu.pipeline_mode<synchronous>, transform_indices = @transform_3, window_bounds = array<i64: 1, 512>}, {pipeline_mode = #tpu.pipeline_mode<synchronous>, transform_indices = @transform_4, window_bounds = array<i64: 128, 128>}, {pipeline_mode = #tpu.pipeline_mode<synchronous>, transform_indices = @transform_5, window_bounds = array<i64: 1, 128>}, {transform_indices = @transform_6, window_bounds = array<i64: 1, 8, 128>}, {transform_indices = @transform_7, window_bounds = array<i64: 1, 8, 128>}]} {
    %c0_i32 = arith.constant 0 : i32
    %0 = arith.cmpi eq, %arg0, %c0_i32 : i32
    %1 = arith.extui %0 : i1 to i32
    %c0_i32_0 = arith.constant 0 : i32
    %2 = arith.cmpi ne, %1, %c0_i32_0 : i32
    scf.if %2 {
      %c0_25 = arith.constant 0 : index
      %c0_26 = arith.constant 0 : index
      %46 = vector.load %arg1[%c0_25, %c0_26] : memref<8x128xf32, #tpu.memory_space<vmem>>, vector<8x128xf32>
      %c0_27 = arith.constant 0 : index
      %c0_28 = arith.constant 0 : index
      %47 = vector.load %arg9[%c0_27, %c0_28] : memref<8x128xf32, #tpu.memory_space<vmem>>, vector<8x128xf32>
      tpu.vector_store %arg9[%c0_27, %c0_28], %46 {strides = array<i32>} : memref<8x128xf32, #tpu.memory_space<vmem>>, vector<8x128xf32>,
    } else {
    }
    %c0 = arith.constant 0 : index
    %c0_1 = arith.constant 0 : index
    %c0_2 = arith.constant 0 : index
    %3 = vector.load %arg2[%c0, %c0_1, %c0_2] : memref<1x8x128xf32, #tpu.memory_space<vmem>>, vector<1x8x128xf32>
    %4 = vector.shape_cast %3 : vector<1x8x128xf32> to vector<8x128xf32>
    %c0_3 = arith.constant 0 : index
    %c0_4 = arith.constant 0 : index
    %5 = vector.load %arg9[%c0_3, %c0_4] : memref<8x128xf32, #tpu.memory_space<vmem>>, vector<8x128xf32>
    %6 = tpu.concatenate %4, %5 in 1 : vector<8x128xf32>, vector<8x128xf32> -> vector<8x256xf32>
    %c0_5 = arith.constant 0 : index
    %c0_6 = arith.constant 0 : index
    %7 = vector.load %arg3[%c0_5, %c0_6] : memref<256x512xf32, #tpu.memory_space<vmem>>, vector<256x512xf32>
    %cst = arith.constant dense<0.000000e+00> : vector<8x512xf32>
    %8 = tpu.matmul %6, %7, %cst {dimension_numbers = #tpu.dot_dimension_numbers<[1], [0], [0], [1], [0, 0, 1, 1], [], []>} : vector<8x256xf32>, vector<256x512xf32>, vector<8x512xf32> -> vector<8x512xf32>
    %c0_7 = arith.constant 0 : index
    %c0_8 = arith.constant 0 : index
    %9 = vector.load %arg4[%c0_7, %c0_8] : memref<1x512xf32, #tpu.memory_space<vmem>>, vector<1x512xf32>
    %10 = vector.broadcast %9 : vector<1x512xf32> to vector<8x512xf32>
    %11 = arith.addf %8, %10 : vector<8x512xf32>
    %12 = vector.extract_strided_slice %11 {offsets = [0, 0], sizes = [8, 128], strides = [1, 1]} : vector<8x512xf32> to vector<8x128xf32>
    %13 = arith.negf %12 : vector<8x128xf32>
    %14 = math.exp %13 : vector<8x128xf32>
    %cst_9 = arith.constant 1.000000e+00 : f32
    %15 = vector.broadcast %cst_9 : f32 to vector<8x128xf32>
    %16 = arith.addf %15, %14 : vector<8x128xf32>
    %17 = arith.divf %15, %16 : vector<8x128xf32>
    %18 = vector.extract_strided_slice %11 {offsets = [0, 128], sizes = [8, 128], strides = [1, 1]} : vector<8x512xf32> to vector<8x128xf32>
    %19 = arith.negf %18 : vector<8x128xf32>
    %20 = math.exp %19 : vector<8x128xf32>
    %cst_10 = arith.constant 1.000000e+00 : f32
    %21 = vector.broadcast %cst_10 : f32 to vector<8x128xf32>
    %22 = arith.addf %21, %20 : vector<8x128xf32>
    %23 = arith.divf %21, %22 : vector<8x128xf32>
    %24 = vector.extract_strided_slice %11 {offsets = [0, 256], sizes = [8, 128], strides = [1, 1]} : vector<8x512xf32> to vector<8x128xf32>
    %25 = vector.extract_strided_slice %11 {offsets = [0, 384], sizes = [8, 128], strides = [1, 1]} : vector<8x512xf32> to vector<8x128xf32>
    %26 = arith.mulf %17, %25 : vector<8x128xf32>
    %27 = arith.addf %24, %26 : vector<8x128xf32>
    %28 = math.tanh %27 : vector<8x128xf32>
    %cst_11 = arith.constant 1.000000e+00 : f32
    %29 = vector.broadcast %cst_11 : f32 to vector<8x128xf32>
    %30 = arith.subf %29, %23 : vector<8x128xf32>
    %31 = arith.mulf %30, %28 : vector<8x128xf32>
    %32 = arith.mulf %23, %5 : vector<8x128xf32>
    %33 = arith.addf %31, %32 : vector<8x128xf32>
    %c0_12 = arith.constant 0 : index
    %c0_13 = arith.constant 0 : index
    %34 = vector.load %arg9[%c0_12, %c0_13] : memref<8x128xf32, #tpu.memory_space<vmem>>, vector<8x128xf32>
    tpu.vector_store %arg9[%c0_12, %c0_13], %33 {strides = array<i32>} : memref<8x128xf32, #tpu.memory_space<vmem>>, vector<8x128xf32>,
    %c0_14 = arith.constant 0 : index
    %c0_15 = arith.constant 0 : index
    %c0_16 = arith.constant 0 : index
    %35 = vector.load %arg8[%c0_14, %c0_15, %c0_16] : memref<1x8x128xf32, #tpu.memory_space<vmem>>, vector<1x8x128xf32>
    %36 = vector.shape_cast %35 : vector<1x8x128xf32> to vector<8x128xf32>
    %37 = vector.shape_cast %33 : vector<8x128xf32> to vector<1x8x128xf32>
    tpu.vector_store %arg8[%c0_14, %c0_15, %c0_16], %37 {strides = array<i32>} : memref<1x8x128xf32, #tpu.memory_space<vmem>>, vector<1x8x128xf32>,
    %c0_17 = arith.constant 0 : index
    %c0_18 = arith.constant 0 : index
    %38 = vector.load %arg5[%c0_17, %c0_18] : memref<128x128xf32, #tpu.memory_space<vmem>>, vector<128x128xf32>
    %cst_19 = arith.constant dense<0.000000e+00> : vector<8x128xf32>
    %39 = tpu.matmul %33, %38, %cst_19 {dimension_numbers = #tpu.dot_dimension_numbers<[1], [0], [0], [1], [0, 0, 1, 1], [], []>} : vector<8x128xf32>, vector<128x128xf32>, vector<8x128xf32> -> vector<8x128xf32>
    %c0_20 = arith.constant 0 : index
    %c0_21 = arith.constant 0 : index
    %40 = vector.load %arg6[%c0_20, %c0_21] : memref<1x128xf32, #tpu.memory_space<vmem>>, vector<1x128xf32>
    %41 = vector.broadcast %40 : vector<1x128xf32> to vector<8x128xf32>
    %42 = arith.addf %39, %41 : vector<8x128xf32>
    %c0_22 = arith.constant 0 : index
    %c0_23 = arith.constant 0 : index
    %c0_24 = arith.constant 0 : index
    %43 = vector.load %arg7[%c0_22, %c0_23, %c0_24] : memref<1x8x128xf32, #tpu.memory_space<vmem>>, vector<1x8x128xf32>
    %44 = vector.shape_cast %43 : vector<1x8x128xf32> to vector<8x128xf32>
    %45 = vector.shape_cast %42 : vector<8x128xf32> to vector<1x8x128xf32>
    tpu.vector_store %arg7[%c0_22, %c0_23, %c0_24], %45 {strides = array<i32>} : memref<1x8x128xf32, #tpu.memory_space<vmem>>, vector<1x8x128xf32>,
    return
  }
  func.func @transform_0(%arg0: i32) -> (i32, i32) {
    %c0_i32 = arith.constant 0 : i32
    %c0_i32_0 = arith.constant 0 : i32
    %c0_i32_1 = arith.constant 0 : i32
    return %c0_i32, %c0_i32_0 : i32, i32
  }
  func.func @transform_1(%arg0: i32) -> (i32, i32, i32) {
    %c0_i32 = arith.constant 0 : i32
    %c0_i32_0 = arith.constant 0 : i32
    %c0_i32_1 = arith.constant 0 : i32
    return %arg0, %c0_i32, %c0_i32_0 : i32, i32, i32
  }
  func.func @transform_2(%arg0: i32) -> (i32, i32) {
    %c0_i32 = arith.constant 0 : i32
    %c0_i32_0 = arith.constant 0 : i32
    %c0_i32_1 = arith.constant 0 : i32
    return %c0_i32, %c0_i32_0 : i32, i32
  }
  func.func @transform_3(%arg0: i32) -> (i32, i32) {
    %c0_i32 = arith.constant 0 : i32
    %c0_i32_0 = arith.constant 0 : i32
    %c0_i32_1 = arith.constant 0 : i32
    return %c0_i32, %c0_i32_0 : i32, i32
  }
  func.func @transform_4(%arg0: i32) -> (i32, i32) {
    %c0_i32 = arith.constant 0 : i32
    %c0_i32_0 = arith.constant 0 : i32
    %c0_i32_1 = arith.constant 0 : i32
    return %c0_i32, %c0_i32_0 : i32, i32
  }
  func.func @transform_5(%arg0: i32) -> (i32, i32) {
    %c0_i32 = arith.constant 0 : i32
    %c0_i32_0 = arith.constant 0 : i32
    %c0_i32_1 = arith.constant 0 : i32
    return %c0_i32, %c0_i32_0 : i32, i32
  }
  func.func @transform_6(%arg0: i32) -> (i32, i32, i32) {
    %c0_i32 = arith.constant 0 : i32
    %c0_i32_0 = arith.constant 0 : i32
    %c0_i32_1 = arith.constant 0 : i32
    return %arg0, %c0_i32, %c0_i32_0 : i32, i32, i32
  }
  func.func @transform_7(%arg0: i32) -> (i32, i32, i32) {
    %c0_i32 = arith.constant 0 : i32
    %c0_i32_0 = arith.constant 0 : i32
    %c0_i32_1 = arith.constant 0 : i32
    return %arg0, %c0_i32, %c0_i32_0 : i32, i32, i32
  }
}

</mosaic_0001>

<bundles_post_ra>
// kernel: tpu_custom_call.1
= control target key start
LH: loop header
LB: loop body
LE: loop exit
PB: predicated region body
PF: predicated region fallthrough
CT: control target
= control target key end

     0   :  { %13 = vsyncpa [#allocation4], 0  ;;  %s1847_s0 = inlined_call_operand.hbm [shape: f32[8,128], index: 0, kind: input, shape index: {}]   ;;  %s1848_s1 = inlined_call_operand.hbm [shape: f32[8,8,128], index: 1, kind: input, shape index: {}]   ;;  %s1849_s2 = inlined_call_operand.hbm [shape: f32[256,512], index: 2, kind: input, shape index: {}]   ;;  %s1850_s3 = inlined_call_operand.vmem [shape: f32[1,512], index: 3, kind: input, shape index: {}]   ;;  %s1851_s4 = inlined_call_operand.hbm [shape: f32[128,128], index: 4, kind: input, shape index: {}]   ;;  %s1852_s5 = inlined_call_operand.vmem [shape: f32[1,128], index: 5, kind: input, shape index: {}]   ;;  %s1853_s6 = inlined_call_operand.hbm [shape: f32[8,8,128], index: 6, kind: output, shape index: {0}]   ;;  %s1854_s7 = inlined_call_operand.hbm [shape: f32[8,8,128], index: 7, kind: output, shape index: {1}]  }
   0x1   :  { %14 = vsyncpa [#allocation7], 0 }
   0x2   :  { %16 = vsyncpa [#allocation7 + $0x1], 0 }
   0x3   :  { %17 = vsyncpa [#allocation10], 0 }
   0x4   :  { %18 = vsyncpa [#allocation5], 0 }
   0x5   :  { %20 = vsyncpa [#allocation5 + $0x1], 0 }
   0x6   :  { %21 = vsyncpa [#allocation13], 0 }
   0x7   :  { %23 = vsyncpa [#allocation13 + $0x1], 0  ;;  %s1534_s24 = smov 0   ;;  %s1536_s25 = smov 0  }
   0x8   :  { %s1538_s26 = smov 0   ;;  %s1540_s27 = smov 0  }
   0x9 LB: > { %s1555_s28 = sadd.s32 4294967295, %s1479_s27   ;;  %s927_s29 = sadd.s32 4294967294, %s1479_s27   ;;  %s1479_s27 = sphi %s1540_s27, %s1882_s27   ;;  %s1475_s26 = sphi %s1538_s26, %s1881_s26   ;;  %s1471_s25 = sphi %s1536_s25, %s1880_s25   ;;  %s1467_s24 = sphi %s1534_s24, %s1879_s24  }
   0xa   : > { %p70_p0 = scmp.ne.s32.totalorder %s1471_s25, %s1467_s24  ;;  %p1855_p1 = scmp.eq.s32.totalorder %s1555_s28, 0 }
   0xb   : > { %p184_p3 = scmp.eq.s32.totalorder %s927_s29, 7  ;;  %p928_p5 = scmp.ge.s32.totalorder %s1479_s27, 1 }
   0xc   : > { %p1564_p4 = por %p1855_p1, %p70_p0  ;;  %p217_p7 = scmp.lt.s32.totalorder %s1479_s27, 9 }
   0xd   : > { %p1569_p6 = por %p184_p3, %p70_p0  ;;  %s1481_s10 = smov [#allocation8]  }
   0xe   : > { %s1859_s30 = scalar_select %p1564_p4, 1, 0 }
   0xf   : > { %s1860_s8 = scalar_select %p1569_p6, 1, 0 }
  0x10   : > { %p1575_p9 = pnand %p928_p5, %p217_p7  ;;  %s240_s11 = sshll.u32 %s1481_s10, 4  ;;  %s1579_s11 = int_to_ptr.vmem [resolvable:$true] %s240_s11 }
  0x11   : > { %1861 = sst [smem:[#allocation20_spill]] %s1860_s8  ;;  %s1482_s13 = smov [#allocation3]  }
  0x12   : > { %s1862_s9 = scalar_select %p1575_p9, 1, 0 }
  0x13   : > { %p1174_p10 = pneg %p1575_p9  ;;  %s230_s14 = sshll.u32 %s1482_s13, 4  ;;  %s1589_s14 = int_to_ptr.vmem [resolvable:$true] %s230_s14 }
  0x14   : > { %s1483_s15 = smov [#allocation9]   ;;  %s1255_s19 = scalar_lea.hbm %s1849_s2, 16384 }
  0x15   : > { %p1585_p11 = pnand %p1174_p10, %p1855_p1  ;;  %s1591_s16 = sshll.u32 %s1483_s15, 4  ;;  %s257_s16 = int_to_ptr.vmem [resolvable:$true] %s1591_s16 }
  0x16   : > { %p1256_p12 = scmp.ne.s32.totalorder %s1849_s2, %s1255_s19  ;;  %p1262_p5 = scmp.lt.u32.totalorder %s1255_s19, %s1849_s2 }
  0x17   : > { %p1601_p13 = pneg %p1585_p11 }
  0x19   : > { %p1258_p0 = pnand %p1601_p13, %p1256_p12 }
  0x1b   : > { %p1259_p3 = pneg %p1258_p0 }
  0x1d   : > { %p1264_p7 = pnand %p1262_p5, %p1259_p3 }
  0x1f   : > { %1267 = shalt.err (!%p1264_p7)
}
  0x20   : > { %s1268_s10 = scalar_lea.vmem %s1579_s11, 16384  ;;  %p1276_p2 = scmp.lt.s32.totalorder %s1579_s11, %s1579_s11 }
  0x21   : > { %p1269_p10 = scmp.ne.s32.totalorder %s1579_s11, %s1268_s10  ;;  %p1277_p6 = scmp.lt.s32.totalorder %s1268_s10, %s1268_s10 }
  0x23   : > { %p1271_p8 = pnand %p1269_p10, %p1601_p13  ;;  %p1278_p12 = por %p1277_p6, %p1276_p2 }
  0x25   : > { %p1272_p1 = pneg %p1271_p8 }
  0x27   : > { %p1279_p0 = pnand %p1278_p12, %p1272_p1 }
  0x29   : > { %1282 = shalt.err (!%p1279_p0)
}
  0x2a   : > { %s1484_s13 = smov 512   ;;  %s1485_s15 = smov 32  }
  0x2b   : > { %1180 = dma.hbm_to_vmem [thread:$0]  (!%p1585_p11), %s1849_s2, 16384, %s1579_s11, [#allocation7], %s1484_s13, %s1484_s13, %s1485_s15  }
  0x2c   : > { %s1283_s21 = scalar_lea.hbm %s1847_s0, 128 }
  0x2d   : > { %p1284_p2 = scmp.ne.s32.totalorder %s1847_s0, %s1283_s21  ;;  %p1290_p8 = scmp.lt.u32.totalorder %s1283_s21, %s1847_s0 }
  0x2f   : > { %p1286_p1 = pnand %p1284_p2, %p1601_p13 }
  0x31   : > { %p1287_p6 = pneg %p1286_p1 }
  0x33   : > { %p1292_p3 = pnand %p1290_p8, %p1287_p6 }
  0x35   : > { %1295 = shalt.err (!%p1292_p3)
}
  0x36   : > { %s1296_s11 = scalar_lea.vmem %s1589_s14, 128  ;;  %p1304_p12 = scmp.lt.s32.totalorder %s1589_s14, %s1589_s14 }
  0x37   : > { %p1297_p5 = scmp.ne.s32.totalorder %s1589_s14, %s1296_s11  ;;  %p1305_p0 = scmp.lt.s32.totalorder %s1296_s11, %s1296_s11 }
  0x39   : > { %p1299_p7 = pnand %p1297_p5, %p1601_p13  ;;  %p1306_p2 = por %p1305_p0, %p1304_p12 }
  0x3b   : > { %p1300_p10 = pneg %p1299_p7 }
  0x3d   : > { %p1307_p1 = pnand %p1306_p2, %p1300_p10 }
  0x3f   : > { %1310 = shalt.err (!%p1307_p1)
}
  0x40   : > { %1177 = dma.hbm_to_vmem [thread:$0]  (!%p1585_p11), %s1847_s0, 128, %s1589_s14, [#allocation4]  }
  0x41   : > { %s1311_s18 = scalar_lea.hbm %s1851_s4, 2048 }
  0x42   : > { %p1312_p6 = scmp.ne.s32.totalorder %s1851_s4, %s1311_s18  ;;  %p1318_p5 = scmp.lt.u32.totalorder %s1311_s18, %s1851_s4 }
  0x44   : > { %p1314_p8 = pnand %p1312_p6, %p1601_p13 }
  0x46   : > { %p1315_p3 = pneg %p1314_p8 }
  0x48   : > { %p1320_p7 = pnand %p1318_p5, %p1315_p3 }
  0x4a   : > { %1323 = shalt.err (!%p1320_p7)
}
  0x4b   : > { %s1324_s29 = scalar_lea.vmem %s257_s16, 2048  ;;  %p1332_p2 = scmp.lt.s32.totalorder %s257_s16, %s257_s16 }
  0x4c   : > { %p1325_p10 = scmp.ne.s32.totalorder %s257_s16, %s1324_s29  ;;  %p1333_p1 = scmp.lt.s32.totalorder %s1324_s29, %s1324_s29 }
  0x4e   : > { %p1327_p12 = pnand %p1325_p10, %p1601_p13  ;;  %p1334_p4 = por %p1333_p1, %p1332_p2 }
  0x50   : > { %p1328_p0 = pneg %p1327_p12 }
  0x52   : > { %p1335_p9 = pnand %p1334_p4, %p1328_p0 }
  0x54   : > { %1338 = shalt.err (!%p1335_p9)
}
  0x55   : > { %s1486_s14 = smov 128   ;;  %s1487_s22 = smov 8  }
  0x56   : > { %1183 = dma.hbm_to_vmem [thread:$0]  (!%p1585_p11), %s1851_s4, 2048, %s257_s16, [#allocation10], %s1486_s14, %s1486_s14, %s1487_s22  }
  0x57   : > { %s1665_s8 = sadd.s32 1, %s1479_s27   ;;  %s57_s15 = sadd.s32 1, %s1475_s26 }
  0x58   : > { %s54_s13 = ssub.s32 %s1479_s27, %s1665_s8  ;;  %p64_p9 = scmp.ne.s32.totalorder %s1475_s26, %s1471_s25 }
  0x59   : > { %p55_p4 = scmp.eq.s32.totalorder %s54_s13, 0  ;;  %p65_p13 = scmp.eq.s32.totalorder %s1479_s27, 0 }
  0x5a   : > { %p1198_p6 = scmp.lt.s32.totalorder %s1479_s27, 8  ;;  %p1865_p3 = scmp.eq.s32.totalorder %s1555_s28, 7 }
  0x5b   : > { %s1675_s17 = scalar_select %p55_p4, %s1475_s26, %s57_s15  }
  0x5c   : > { %p66_p8 = por %p65_p13, %p64_p9  ;;  %p1679_p5 = por %p1865_p3, %p64_p9 }
  0x5d   : > { %s273_s12 = sand.u32 1, %s1479_s27   ;;  %s275_s19 = sand.u32 1, %s1475_s26  }
  0x5e   : > { %s933_s16 = sshll.u32 %s275_s19, 3  ;;  %s934_s20 = sshll.u32 %s1479_s27, 7 }
  0x5f   : > { %s1689_s29 = scalar_lea.hbm %s1848_s1, %s934_s20  ;;  %s277_s14 = scalar_lea.vmem [#allocation6], %s933_s16 }
  0x60   : > { %s284_s22 = sshll.u32 %s277_s14, 4  ;;  %p1693_p11 = pnand %p1198_p6, %p66_p8  ;;  %s1691_s22 = int_to_ptr.vmem [resolvable:$true] %s284_s22 }
  0x61   : > { %s274_s11 = scalar_lea.sflag [#allocation7], %s273_s12  ;;  %s1339_s13 = scalar_lea.hbm %s1689_s29, 128 }
  0x62   : > { %p1340_p7 = scmp.ne.s32.totalorder %s1689_s29, %s1339_s13  ;;  %p1341_p10 = pneg %p1693_p11 }
  0x63   : > { %s1344_s16 = scalar_lea.hbm %s1848_s1, 1024  ;;  %p1345_p2 = scmp.lt.u32.totalorder %s1689_s29, %s1848_s1 }
  0x64   : > { %p1342_p12 = pnand %p1341_p10, %p1340_p7  ;;  %p1346_p1 = scmp.lt.u32.totalorder %s1344_s16, %s1339_s13 }
  0x65   : > { %p1348_p9 = scmp.lt.u32.totalorder %s1339_s13, %s1689_s29 }
  0x66   : > { %p1343_p0 = pneg %p1342_p12  ;;  %p1347_p4 = por %p1346_p1, %p1345_p2 }
  0x68   : > { %p1349_p13 = por %p1348_p9, %p1347_p4 }
  0x6a   : > { %p1350_p6 = pnand %p1349_p13, %p1343_p0 }
  0x6c   : > { %1353 = shalt.err (!%p1350_p6)
}
  0x6d   : > { %s1354_s12 = scalar_lea.vmem %s1691_s22, 128  ;;  %s1488_s23 = smov [#allocation6]  }
  0x6e   : > { %p1355_p8 = scmp.ne.s32.totalorder %s1691_s22, %s1354_s12  ;;  %s1359_s14 = sshll.u32 %s1488_s23, 4  ;;  %s1360_s14 = int_to_ptr.vmem [resolvable:$false] %s1359_s14 }
  0x6f   : > { %s1361_s15 = scalar_lea.vmem %s1360_s14, 256  ;;  %p1362_p12 = scmp.lt.s32.totalorder %s1691_s22, %s1360_s14 }
  0x70   : > { %p1357_p3 = pnand %p1355_p8, %p1341_p10  ;;  %p1363_p2 = scmp.lt.s32.totalorder %s1361_s15, %s1354_s12 }
  0x72   : > { %p1358_p7 = pneg %p1357_p3  ;;  %p1364_p1 = por %p1363_p2, %p1362_p12 }
  0x74   : > { %p1365_p4 = pnand %p1364_p1, %p1358_p7 }
  0x76   : > { %1368 = shalt.err (!%p1365_p4)
}
  0x77   : > { %1187 = dma.hbm_to_vmem [thread:$0]  (!%p1693_p11), %s1689_s29, 128, %s1691_s22, %s274_s11  }
  0x78   : > { %p1868_p0 = scmp.ne.s32.totalorder %s1862_s9, 0 }
  0x79   : > { %p1869_p10 = scmp.eq.s32.totalorder (!%p1868_p0), %s1555_s28, 0 }
  0x7a   : > { %293 = sbr.rel (%p1868_p0) target bundleno = 706 (0x2c2), region = 44 }
  0x81   : > { %1442 = dma.done.wait (%p1869_p10), [#allocation4], 128   ;;  %p1870_p9 = pmov %p1869_p10 }
  0x82   : > { %s299_s13 = sand.u32 1, %s1555_s28   ;;  %s1730_s19 = sand.u32 1, %s1471_s25  }
  0x83   : > { %1444 = vsyncadd (%p1870_p9), [#allocation4], 4294967168  ;;  %s1733_s10 = sshll.u32 %s1730_s19, 3  ;;  %s300_s29 = scalar_lea.sflag [#allocation7], %s299_s13 }
  0x84   : > { %s303_s22 = scalar_lea.vmem [#allocation6], %s1733_s10  ;;  %p1871_p11 = scmp.ne.s32.totalorder %s1859_s30, 0 }
  0x86   : > { %1446 = dma.done.wait (%p1871_p11), %s300_s29, 128  }
  0x87   : > { %1448 = vsyncadd (%p1871_p11), %s300_s29, 4294967168  ;;  %p1872_p13 = pmov %p1870_p9 }
  0x88   : > { %p1873_p6 = pmov %p1870_p9 }
  0x89   : > { %1450 = dma.done.wait (%p1872_p13), [#allocation7], 16384  }
  0x8a   : > { %1452 = vsyncadd (%p1873_p6), [#allocation7], 4294950912  ;;  %p1874_p8 = pmov %p1873_p6 }
  0x8b   : > { %p1875_p3 = pmov %p1873_p6 }
  0x8c   : > { %1454 = dma.done.wait (%p1874_p8), [#allocation10], 2048  }
  0x8d   : > { %1456 = vsyncadd (%p1875_p3), [#allocation10], 4294965248  ;;  %s339_s9 = scalar_lea.vmem [#allocation11], %s1733_s10  ;;  %s346_s11 = scalar_lea.vmem [#allocation12], %s1733_s10 }
  0x8e   : > { %p1876_p7 = scmp.ne.s32.totalorder %s1555_s28, 0 }
  0x8f   : > { %v351_v0 = vld [vmem:[#allocation3] sm:$0xff] (!%p1876_p7) }
  0x90   : > { %350 = sbr.rel (%p1876_p7) target bundleno = 151 (0x97), region = 64  ;;  %352 = vst [vmem:[#allocation2] sm:$0xff] (!%p1876_p7), %v351_v0 }
  0x97 PF: > { %v356_v1 = vld [vmem:[#allocation8 + $0x8] sm:$0xff]  ;;  %v355_v3 = vld [vmem:[#allocation8] sm:$0xff]  ;;  %v358_v22 = vld [vmem:[#allocation8 + $0x18] sm:$0xff]  ;;  %vm1490_vm0 = vmmov 0   ;;  %s948_s20 = sshll.u32 %s1555_s28, 7  ;;  %s794_s14 = sshll.u32 %s346_s11, 4  ;;  %s795_s14 = int_to_ptr.vmem [resolvable:$true] %s794_s14 }
  0x98   : > { %v360_v2 = vld [vmem:[#allocation8 + $0x28] sm:$0xff]  ;;  %v359_v5 = vld [vmem:[#allocation8 + $0x20] sm:$0xff]  ;;  %v362_v26 = vld [vmem:[#allocation8 + $0x38] sm:$0xff]  ;;  %s1770_s23 = scalar_lea.hbm %s1854_s7, %s948_s20  ;;  %s768_s15 = scalar_lea.sflag [#allocation13], %s1730_s19 }
  0x99   : > { %v1004_v4 = vpack.c.bf16 %v360_v2, %v356_v1  ;;  %v364_v6 = vld [vmem:[#allocation8 + $0x48] sm:$0xff]  ;;  %v1006_v8 = vpack.c.bf16 %v359_v5, %v355_v3  ;;  %v363_v10 = vld [vmem:[#allocation8 + $0x40] sm:$0xff]  ;;  %v1068_v28 = vpack.c.bf16 %v362_v26, %v358_v22  ;;  %v357_v29 = vld [vmem:[#allocation8 + $0x10] sm:$0xff]  ;;  %s1369_s13 = scalar_lea.vmem %s795_s14, 128  ;;  %s1492_s29 = smov [#allocation12]  }
  0x9a   : > { %v368_v7 = vld [vmem:[#allocation8 + $0x68] sm:$0xff]  ;;  %v367_v11 = vld [vmem:[#allocation8 + $0x60] sm:$0xff]  ;;  %v361_v30 = vld [vmem:[#allocation8 + $0x30] sm:$0xff]  ;;  %p1370_p12 = scmp.ne.s32.totalorder %s795_s14, %s1369_s13 }
  0x9b   : > { %v1008_v9 = vpack.c.bf16 %v368_v7, %v364_v6  ;;  %v372_v12 = vld [vmem:[#allocation8 + $0x88] sm:$0xff]  ;;  %1005 = vmatprep.subr.bf16.mxu0 %v1004_v4  ;;  %v1010_v14 = vpack.c.bf16 %v367_v11, %v363_v10  ;;  %v371_v16 = vld [vmem:[#allocation8 + $0x80] sm:$0xff]  ;;  %v1070_v31 = vpack.c.bf16 %v361_v30, %v357_v29  ;;  %v366_v32 = vld [vmem:[#allocation8 + $0x58] sm:$0xff]  ;;  %1069 = vmatprep.subr.bf16.mxu1 %v1068_v28 }
  0x9c   : > { %v376_v13 = vld [vmem:[#allocation8 + $0xa8] sm:$0xff]  ;;  %1007 = vmatpush1.bf16.msra.mxu0 %v1006_v8  ;;  %v375_v17 = vld [vmem:[#allocation8 + $0xa0] sm:$0xff]  ;;  %v370_v33 = vld [vmem:[#allocation8 + $0x78] sm:$0xff]  ;;  %p1371_p2 = pnand %p1370_p12, %p1679_p5 }
  0x9d   : > { %1009 = vmatprep.subr.bf16.mxu0 %v1008_v9  ;;  %v1012_v15 = vpack.c.bf16 %v376_v13, %v372_v12  ;;  %v380_v18 = vld [vmem:[#allocation8 + $0xc8] sm:$0xff]  ;;  %v1014_v20 = vpack.c.bf16 %v375_v17, %v371_v16  ;;  %v379_v21 = vld [vmem:[#allocation8 + $0xc0] sm:$0xff]  ;;  %v1072_v36 = vpack.c.bf16 %v370_v33, %v366_v32  ;;  %v365_v37 = vld [vmem:[#allocation8 + $0x50] sm:$0xff]  ;;  %1071 = vmatpush1.bf16.msra.mxu1 %v1070_v31 }
  0x9e   : > { %v384_v19 = vld [vmem:[#allocation8 + $0xe8] sm:$0xff]  ;;  %v383_v24 = vld [vmem:[#allocation8 + $0xe0] sm:$0xff]  ;;  %v369_v41 = vld [vmem:[#allocation8 + $0x70] sm:$0xff]  ;;  %p1372_p1 = pneg %p1371_p2 }
  0x9f   : > { %v1016_v23 = vpack.c.bf16 %v384_v19, %v380_v18  ;;  %v388_v25 = vld [vmem:[#allocation8 + $0x108] sm:$0xff]  ;;  %v1018_v34 = vpack.c.bf16 %v383_v24, %v379_v21  ;;  %v387_v35 = vld [vmem:[#allocation8 + $0x100] sm:$0xff]  ;;  %1073 = vmatprep.subr.bf16.mxu1 %v1072_v36  ;;  %v1074_v43 = vpack.c.bf16 %v369_v41, %v365_v37  ;;  %v374_v44 = vld [vmem:[#allocation8 + $0x98] sm:$0xff] }
  0xa0   : > { %1011 = vmatpush1.bf16.msra.mxu0 %v1010_v14  ;;  %v392_v27 = vld [vmem:[#allocation8 + $0x128] sm:$0xff]  ;;  %v391_v39 = vld [vmem:[#allocation8 + $0x120] sm:$0xff]  ;;  %v378_v45 = vld [vmem:[#allocation8 + $0xb8] sm:$0xff] }
  0xa1   : > { %1013 = vmatprep.subr.bf16.mxu0 %v1012_v15  ;;  %v1020_v38 = vpack.c.bf16 %v392_v27, %v388_v25  ;;  %v396_v40 = vld [vmem:[#allocation8 + $0x148] sm:$0xff]  ;;  %v1076_v46 = vpack.c.bf16 %v378_v45, %v374_v44  ;;  %v373_v47 = vld [vmem:[#allocation8 + $0x90] sm:$0xff]  ;;  %v1022_v49 = vpack.c.bf16 %v391_v39, %v387_v35  ;;  %v395_v50 = vld [vmem:[#allocation8 + $0x140] sm:$0xff]  ;;  %1075 = vmatpush1.bf16.msra.mxu1 %v1074_v43 }
  0xa2   : > { %v400_v42 = vld [vmem:[#allocation8 + $0x168] sm:$0xff]  ;;  %v377_v48 = vld [vmem:[#allocation8 + $0xb0] sm:$0xff]  ;;  %v382_v51 = vld [vmem:[#allocation8 + $0xd8] sm:$0xff] }
  0xa3   : > { %v1024_v52 = vpack.c.bf16 %v400_v42, %v396_v40  ;;  %v399_v53 = vld [vmem:[#allocation8 + $0x160] sm:$0xff]  ;;  %v404_v54 = vld [vmem:[#allocation8 + $0x188] sm:$0xff]  ;;  %v1078_v55 = vpack.c.bf16 %v377_v48, %v373_v47  ;;  %v386_v56 = vld [vmem:[#allocation8 + $0xf8] sm:$0xff]  ;;  %1077 = vmatprep.subr.bf16.mxu1 %v1076_v46 }
  0xa4   : > { %1015 = vmatpush1.bf16.msra.mxu0 %v1014_v20  ;;  %v408_v57 = vld [vmem:[#allocation8 + $0x1a8] sm:$0xff]  ;;  %v1080_v58 = vpack.c.bf16 %v386_v56, %v382_v51  ;;  %v381_v59 = vld [vmem:[#allocation8 + $0xd0] sm:$0xff]  ;;  %v390_v61 = vld [vmem:[#allocation8 + $0x118] sm:$0xff]  ;;  %v1026_v63 = vpack.c.bf16 %v399_v53, %v395_v50 }
  0xa5   : > { %1017 = vmatprep.subr.bf16.mxu0 %v1016_v23  ;;  %v385_v60 = vld [vmem:[#allocation8 + $0xf0] sm:$0xff]  ;;  %v394_v62 = vld [vmem:[#allocation8 + $0x138] sm:$0xff]  ;;  %v1028_v0 = vpack.c.bf16 %v408_v57, %v404_v54  ;;  %v403_v1 = vld [vmem:[#allocation8 + $0x180] sm:$0xff]  ;;  %1079 = vmatpush1.bf16.msra.mxu1 %v1078_v55 }
  0xa6   : > { %v407_v2 = vld [vmem:[#allocation8 + $0x1a0] sm:$0xff]  ;;  %v412_v3 = vld [vmem:[#allocation8 + $0x1c8] sm:$0xff]  ;;  %v1082_v4 = vpack.c.bf16 %v385_v60, %v381_v59  ;;  %1081 = vmatprep.subr.bf16.mxu1 %v1080_v58  ;;  %v1084_v6 = vpack.c.bf16 %v394_v62, %v390_v61  ;;  %v389_v7 = vld [vmem:[#allocation8 + $0x110] sm:$0xff] }
  0xa7   : > { %v416_v5 = vld [vmem:[#allocation8 + $0x1e8] sm:$0xff]  ;;  %v393_v8 = vld [vmem:[#allocation8 + $0x130] sm:$0xff]  ;;  %v398_v9 = vld [vmem:[#allocation8 + $0x158] sm:$0xff]  ;;  %v1030_v11 = vpack.c.bf16 %v407_v2, %v403_v1 }
  0xa8   : > { %1019 = vmatpush1.bf16.msra.mxu0 %v1018_v34  ;;  %v402_v10 = vld [vmem:[#allocation8 + $0x178] sm:$0xff]  ;;  %v1032_v12 = vpack.c.bf16 %v416_v5, %v412_v3  ;;  %v411_v13 = vld [vmem:[#allocation8 + $0x1c0] sm:$0xff]  ;;  %v420_v15 = vld [vmem:[#allocation8 + $0x208] sm:$0xff]  ;;  %v1086_v16 = vpack.c.bf16 %v393_v8, %v389_v7 }
  0xa9   : > { %1021 = vmatprep.subr.bf16.mxu0 %v1020_v38  ;;  %v415_v14 = vld [vmem:[#allocation8 + $0x1e0] sm:$0xff]  ;;  %1083 = vmatpush1.bf16.msra.mxu1 %v1082_v4  ;;  %v424_v17 = vld [vmem:[#allocation8 + $0x228] sm:$0xff]  ;;  %v1088_v18 = vpack.c.bf16 %v402_v10, %v398_v9  ;;  %v397_v19 = vld [vmem:[#allocation8 + $0x150] sm:$0xff] }
  0xaa   : > { %1085 = vmatprep.subr.bf16.mxu1 %v1084_v6  ;;  %v401_v20 = vld [vmem:[#allocation8 + $0x170] sm:$0xff]  ;;  %v406_v21 = vld [vmem:[#allocation8 + $0x198] sm:$0xff]  ;;  %v1034_v23 = vpack.c.bf16 %v415_v14, %v411_v13  ;;  %v1036_v24 = vpack.c.bf16 %v424_v17, %v420_v15  ;;  %v419_v25 = vld [vmem:[#allocation8 + $0x200] sm:$0xff] }
  0xab   : > { %v410_v22 = vld [vmem:[#allocation8 + $0x1b8] sm:$0xff]  ;;  %v423_v26 = vld [vmem:[#allocation8 + $0x220] sm:$0xff]  ;;  %v428_v27 = vld [vmem:[#allocation8 + $0x248] sm:$0xff]  ;;  %v1090_v28 = vpack.c.bf16 %v401_v20, %v397_v19 }
  0xac   : > { %1023 = vmatpush1.bf16.msra.mxu0 %v1022_v49  ;;  %v432_v29 = vld [vmem:[#allocation8 + $0x268] sm:$0xff]  ;;  %v1092_v30 = vpack.c.bf16 %v410_v22, %v406_v21  ;;  %v405_v31 = vld [vmem:[#allocation8 + $0x190] sm:$0xff]  ;;  %v414_v33 = vld [vmem:[#allocation8 + $0x1d8] sm:$0xff]  ;;  %v1038_v35 = vpack.c.bf16 %v423_v26, %v419_v25 }
  0xad   : > { %1025 = vmatprep.subr.bf16.mxu0 %v1024_v52  ;;  %1087 = vmatpush1.bf16.msra.mxu1 %v1086_v16  ;;  %v409_v32 = vld [vmem:[#allocation8 + $0x1b0] sm:$0xff]  ;;  %v418_v34 = vld [vmem:[#allocation8 + $0x1f8] sm:$0xff]  ;;  %v427_v36 = vld [vmem:[#allocation8 + $0x240] sm:$0xff]  ;;  %v1040_v37 = vpack.c.bf16 %v432_v29, %v428_v27 }
  0xae   : > { %1089 = vmatprep.subr.bf16.mxu1 %v1088_v18  ;;  %v431_v38 = vld [vmem:[#allocation8 + $0x260] sm:$0xff]  ;;  %v436_v39 = vld [vmem:[#allocation8 + $0x288] sm:$0xff]  ;;  %v1094_v41 = vpack.c.bf16 %v409_v32, %v405_v31  ;;  %v1096_v42 = vpack.c.bf16 %v418_v34, %v414_v33  ;;  %v413_v43 = vld [vmem:[#allocation8 + $0x1d0] sm:$0xff] }
  0xaf   : > { %v440_v40 = vld [vmem:[#allocation8 + $0x2a8] sm:$0xff]  ;;  %v417_v44 = vld [vmem:[#allocation8 + $0x1f0] sm:$0xff]  ;;  %v1752_v45 = vld [vmem:[#allocation2] sm:$0xff]  ;;  %v1042_v48 = vpack.c.bf16 %v431_v38, %v427_v36 }
  0xb0   : > { %1027 = vmatpush1.bf16.msra.mxu0 %v1026_v63  ;;  %v422_v46 = vld [vmem:[#allocation8 + $0x218] sm:$0xff]  ;;  %569 = vmatprep.mubr.f32.mxu0 %v1752_v45  ;;  %v1044_v49 = vpack.c.bf16 %v440_v40, %v436_v39  ;;  %v435_v50 = vld [vmem:[#allocation8 + $0x280] sm:$0xff]  ;;  %v444_v52 = vld [vmem:[#allocation8 + $0x2c8] sm:$0xff]  ;;  %v1098_v53 = vpack.c.bf16 %v417_v44, %v413_v43 }
  0xb1   : > { %1029 = vmatprep.subr.bf16.mxu0 %v1028_v0  ;;  %1091 = vmatpush1.bf16.msra.mxu1 %v1090_v28  ;;  %v426_v47 = vld [vmem:[#allocation8 + $0x238] sm:$0xff]  ;;  %v439_v51 = vld [vmem:[#allocation8 + $0x2a0] sm:$0xff]  ;;  %v448_v54 = vld [vmem:[#allocation8 + $0x2e8] sm:$0xff] }
  0xb2   : > { %1093 = vmatprep.subr.bf16.mxu1 %v1092_v30  ;;  %640 = vmatprep.mubr.f32.mxu1 %v1752_v45  ;;  %v1100_v55 = vpack.c.bf16 %v426_v47, %v422_v46  ;;  %v421_v56 = vld [vmem:[#allocation8 + $0x210] sm:$0xff]  ;;  %v430_v58 = vld [vmem:[#allocation8 + $0x258] sm:$0xff]  ;;  %v1046_v60 = vpack.c.bf16 %v439_v51, %v435_v50  ;;  %v1048_v61 = vpack.c.bf16 %v448_v54, %v444_v52  ;;  %v443_v62 = vld [vmem:[#allocation8 + $0x2c0] sm:$0xff] }
  0xb3   : > { %v425_v57 = vld [vmem:[#allocation8 + $0x230] sm:$0xff]  ;;  %v434_v59 = vld [vmem:[#allocation8 + $0x278] sm:$0xff]  ;;  %v447_v63 = vld [vmem:[#allocation8 + $0x2e0] sm:$0xff] }
  0xb4   : > { %1031 = vmatpush1.bf16.msra.mxu0 %v1030_v11  ;;  %v452_v0 = vld [vmem:[#allocation8 + $0x308] sm:$0xff]  ;;  %v1102_v1 = vpack.c.bf16 %v425_v57, %v421_v56  ;;  %v1104_v3 = vpack.c.bf16 %v434_v59, %v430_v58  ;;  %v429_v4 = vld [vmem:[#allocation8 + $0x250] sm:$0xff]  ;;  %v438_v6 = vld [vmem:[#allocation8 + $0x298] sm:$0xff]  ;;  %v1050_v8 = vpack.c.bf16 %v447_v63, %v443_v62 }
  0xb5   : > { %1033 = vmatprep.subr.bf16.mxu0 %v1032_v12  ;;  %1095 = vmatpush1.bf16.msra.mxu1 %v1094_v41  ;;  %v456_v2 = vld [vmem:[#allocation8 + $0x328] sm:$0xff]  ;;  %v433_v5 = vld [vmem:[#allocation8 + $0x270] sm:$0xff]  ;;  %v442_v7 = vld [vmem:[#allocation8 + $0x2b8] sm:$0xff] }
  0xb6   : > { %1097 = vmatprep.subr.bf16.mxu1 %v1096_v42  ;;  %v1052_v9 = vpack.c.bf16 %v456_v2, %v452_v0  ;;  %v451_v10 = vld [vmem:[#allocation8 + $0x300] sm:$0xff]  ;;  %v460_v12 = vld [vmem:[#allocation8 + $0x348] sm:$0xff]  ;;  %v1106_v13 = vpack.c.bf16 %v433_v5, %v429_v4  ;;  %v1108_v15 = vpack.c.bf16 %v442_v7, %v438_v6  ;;  %v437_v16 = vld [vmem:[#allocation8 + $0x290] sm:$0xff]  ;;  %v1489_v7 = vmov 0.0|0.0  }
  0xb7   : > { %v455_v11 = vld [vmem:[#allocation8 + $0x320] sm:$0xff]  ;;  %v464_v14 = vld [vmem:[#allocation8 + $0x368] sm:$0xff]  ;;  %v441_v17 = vld [vmem:[#allocation8 + $0x2b0] sm:$0xff] }
  0xb8   : > { %1035 = vmatpush1.bf16.msra.mxu0 %v1034_v23  ;;  %v446_v18 = vld [vmem:[#allocation8 + $0x2d8] sm:$0xff]  ;;  %v1054_v20 = vpack.c.bf16 %v455_v11, %v451_v10  ;;  %v1056_v21 = vpack.c.bf16 %v464_v14, %v460_v12  ;;  %v459_v22 = vld [vmem:[#allocation8 + $0x340] sm:$0xff]  ;;  %v1110_v25 = vpack.c.bf16 %v441_v17, %v437_v16  ;;  %v472_v26 = vld [vmem:[#allocation8 + $0x3a8] sm:$0xff] }
  0xb9   : > { %1037 = vmatprep.subr.bf16.mxu0 %v1036_v24  ;;  %1099 = vmatpush1.bf16.msra.mxu1 %v1098_v53  ;;  %v450_v19 = vld [vmem:[#allocation8 + $0x2f8] sm:$0xff]  ;;  %v463_v23 = vld [vmem:[#allocation8 + $0x360] sm:$0xff]  ;;  %v468_v24 = vld [vmem:[#allocation8 + $0x388] sm:$0xff] }
  0xba   : > { %1101 = vmatprep.subr.bf16.mxu1 %v1100_v55  ;;  %v1112_v27 = vpack.c.bf16 %v450_v19, %v446_v18  ;;  %v445_v28 = vld [vmem:[#allocation8 + $0x2d0] sm:$0xff]  ;;  %v454_v30 = vld [vmem:[#allocation8 + $0x318] sm:$0xff]  ;;  %v1058_v32 = vpack.c.bf16 %v463_v23, %v459_v22  ;;  %v1060_v33 = vpack.c.bf16 %v472_v26, %v468_v24  ;;  %v467_v34 = vld [vmem:[#allocation8 + $0x380] sm:$0xff] }
  0xbb   : > { %v449_v29 = vld [vmem:[#allocation8 + $0x2f0] sm:$0xff]  ;;  %v458_v31 = vld [vmem:[#allocation8 + $0x338] sm:$0xff]  ;;  %v476_v36 = vld [vmem:[#allocation8 + $0x3c8] sm:$0xff] }
  0xbc   : > { %1039 = vmatpush1.bf16.msra.mxu0 %v1038_v35  ;;  %v471_v35 = vld [vmem:[#allocation8 + $0x3a0] sm:$0xff]  ;;  %v480_v38 = vld [vmem:[#allocation8 + $0x3e8] sm:$0xff]  ;;  %v1116_v39 = vpack.c.bf16 %v458_v31, %v454_v30  ;;  %v453_v40 = vld [vmem:[#allocation8 + $0x310] sm:$0xff]  ;;  %v485_v30 = vlaneseq }
  0xbd   : > { %1041 = vmatprep.subr.bf16.mxu0 %v1040_v37  ;;  %1103 = vmatpush1.bf16.msra.mxu1 %v1102_v1  ;;  %v1114_v37 = vpack.c.bf16 %v449_v29, %v445_v28  ;;  %v457_v41 = vld [vmem:[#allocation8 + $0x330] sm:$0xff]  ;;  %v462_v42 = vld [vmem:[#allocation8 + $0x358] sm:$0xff]  ;;  %v1062_v44 = vpack.c.bf16 %v471_v35, %v467_v34  ;;  %v1064_v46 = vpack.c.bf16 %v480_v38, %v476_v36  ;;  %v475_v47 = vld [vmem:[#allocation8 + $0x3c0] sm:$0xff] }
  0xbe   : > { %1105 = vmatprep.subr.bf16.mxu1 %v1104_v3  ;;  %v466_v43 = vld [vmem:[#allocation8 + $0x378] sm:$0xff]  ;;  %v461_v51 = vld [vmem:[#allocation8 + $0x350] sm:$0xff]  ;;  %v668_v4 = vld [vmem:[#allocation9] sm:$0xff]  ;;  %v486_v31 = vshrl.u32 %v485_v30, 7 }
  0xbf   : > { %v1120_v50 = vpack.c.bf16 %v466_v43, %v462_v42  ;;  %v465_v52 = vld [vmem:[#allocation8 + $0x370] sm:$0xff]  ;;  %v470_v53 = vld [vmem:[#allocation8 + $0x398] sm:$0xff]  ;;  %v669_v5 = vld [vmem:[#allocation9 + $0x8] sm:$0xff] }
  0xc0   : > { %1043 = vmatpush1.bf16.msra.mxu0 %v1042_v48  ;;  %v479_v48 = vld [vmem:[#allocation8 + $0x3e0] sm:$0xff]  ;;  %v474_v54 = vld [vmem:[#allocation8 + $0x3b8] sm:$0xff]  ;;  %v1122_v56 = vpack.c.bf16 %v465_v52, %v461_v51  ;;  %v469_v58 = vld [vmem:[#allocation8 + $0x390] sm:$0xff]  ;;  %v1133_v6 = vpack.c.bf16 %v669_v5, %v668_v4  ;;  %v491_v34 = vsub.s32 1, %v486_v31 }
  0xc1   : > { %1045 = vmatprep.subr.bf16.mxu0 %v1044_v49  ;;  %1107 = vmatpush1.bf16.msra.mxu1 %v1106_v13  ;;  %v1118_v49 = vpack.c.bf16 %v457_v41, %v453_v40  ;;  %v1066_v55 = vpack.c.bf16 %v479_v48, %v475_v47  ;;  %v1124_v57 = vpack.c.bf16 %v474_v54, %v470_v53  ;;  %v473_v59 = vld [vmem:[#allocation8 + $0x3b0] sm:$0xff]  ;;  %v672_v11 = vld [vmem:[#allocation9 + $0x20] sm:$0xff]  ;;  %v673_v12 = vld [vmem:[#allocation9 + $0x28] sm:$0xff]  ;;  %v499_v48 = vsub.s32 3, %v486_v31 }
  0xc2   : > { %1109 = vmatprep.subr.bf16.mxu1 %v1108_v15  ;;  %v353_v62 = vld [vmem:[%s303_s22] sm:$0xff]  ;;  %v1126_v63 = vpack.c.bf16 %v473_v59, %v469_v58  ;;  %v1139_v13 = vpack.c.bf16 %v673_v12, %v672_v11  ;;  %v676_v17 = vld [vmem:[#allocation9 + $0x40] sm:$0xff]  ;;  %v677_v18 = vld [vmem:[#allocation9 + $0x48] sm:$0xff]  ;;  %s1373_s22 = sshll.u32 %s1492_s29, 4  ;;  %s1374_s22 = int_to_ptr.vmem [resolvable:$false] %s1373_s22 }
  0xc3   : > { %v477_v1 = vld [vmem:[#allocation8 + $0x3d0] sm:$0xff]  ;;  %v675_v15 = vld [vmem:[#allocation9 + $0x38] sm:$0xff]  ;;  %v1145_v19 = vpack.c.bf16 %v677_v18, %v676_v17  ;;  %v680_v23 = vld [vmem:[#allocation9 + $0x60] sm:$0xff]  ;;  %s1375_s30 = scalar_lea.vmem %s1374_s22, 256  ;;  %p1376_p4 = scmp.lt.s32.totalorder %s795_s14, %s1374_s22 }
  0xc4   : > { %1047 = vmatpush1.bf16.msra.mxu0 %v1046_v60  ;;  %v478_v60 = vld [vmem:[#allocation8 + $0x3d8] sm:$0xff]  ;;  %v481_v2 = vld [vmem:[#allocation8 + $0x3f0] sm:$0xff]  ;;  %v681_v24 = vld [vmem:[#allocation9 + $0x68] sm:$0xff]  ;;  %p1377_p0 = scmp.lt.s32.totalorder %s1375_s30, %s1369_s13 }
  0xc5   : > { %1049 = vmatprep.subr.bf16.mxu0 %v1048_v61  ;;  %1111 = vmatpush1.bf16.msra.mxu1 %v1110_v25  ;;  %v482_v61 = vld [vmem:[#allocation8 + $0x3f8] sm:$0xff]  ;;  %v1130_v3 = vpack.c.bf16 %v481_v2, %v477_v1  ;;  %v674_v14 = vld [vmem:[#allocation9 + $0x30] sm:$0xff]  ;;  %v1491_v25 = vmov 0.0   ;;  %v1151_v26 = vpack.c.bf16 %v681_v24, %v680_v23 }
  0xc6   : > { %1113 = vmatprep.subr.bf16.mxu1 %v1112_v27  ;;  %v1128_v0 = vpack.c.bf16 %v482_v61, %v478_v60  ;;  %v1142_v16 = vpack.c.bf16 %v675_v15, %v674_v14  ;;  %v682_v27 = vld [vmem:[#allocation9 + $0x70] sm:$0xff]  ;;  %v683_v28 = vld [vmem:[#allocation9 + $0x78] sm:$0xff]  ;;  %p1378_p10 = por %p1377_p0, %p1376_p4 }
  0xc7   : > { %v1154_v29 = vpack.c.bf16 %v683_v28, %v682_v27 }
  0xc8   : > { %1051 = vmatpush1.bf16.msra.mxu0 %v1050_v8  ;;  %v670_v8 = vld [vmem:[#allocation9 + $0x10] sm:$0xff]  ;;  %p1379_p9 = pnand %p1378_p10, %p1372_p1 }
  0xc9   : > { %1053 = vmatprep.subr.bf16.mxu0 %v1052_v9  ;;  %1115 = vmatpush1.bf16.msra.mxu1 %v1114_v37  ;;  %v671_v9 = vld [vmem:[#allocation9 + $0x18] sm:$0xff] }
  0xca   : > { %1117 = vmatprep.subr.bf16.mxu1 %v1116_v39  ;;  %v1136_v10 = vpack.c.bf16 %v671_v9, %v670_v8 }
  0xcc   : > { %1055 = vmatpush1.bf16.msra.mxu0 %v1054_v20  ;;  %v678_v20 = vld [vmem:[#allocation9 + $0x50] sm:$0xff] }
  0xcd   : > { %1057 = vmatprep.subr.bf16.mxu0 %v1056_v21  ;;  %1119 = vmatpush1.bf16.msra.mxu1 %v1118_v49  ;;  %v679_v21 = vld [vmem:[#allocation9 + $0x58] sm:$0xff]  ;;  %v495_v49 = vsub.s32 2, %v486_v31 }
  0xce   : > { %1121 = vmatprep.subr.bf16.mxu1 %v1120_v50  ;;  %v1148_v22 = vpack.c.bf16 %v679_v21, %v678_v20 }
  0xd0   : > { %1059 = vmatpush1.bf16.msra.mxu0 %v1058_v32  ;;  %v487_v32 = vsub.s32 0, %v486_v31 }
  0xd1   : > { %1061 = vmatprep.subr.bf16.mxu0 %v1060_v33  ;;  %1123 = vmatpush1.bf16.msra.mxu1 %v1122_v56  ;;  %v483_v33 = vld [vmem:[%s1850_s3] sm:$0xf] }
  0xd2   : > { %1125 = vmatprep.subr.bf16.mxu1 %v1124_v57  ;;  %v488_v35 = vrot.slane %v483_v33, %v487_v32  ;;  %v492_v37 = vrot.slane %v483_v33, %v491_v34  ;;  %v500_v50 = vrot.slane %v483_v33, %v499_v48  ;;  %v496_v53 = vrot.slane %v483_v33, %v495_v49 }
  0xd4   : > { %1063 = vmatpush1.bf16.msra.mxu0 %v1062_v44 }
  0xd5   : > { %1065 = vmatprep.subr.bf16.mxu0 %v1064_v46  ;;  %1127 = vmatpush1.bf16.msra.mxu1 %v1126_v63 }
  0xd6   : > { %1129 = vmatprep.subr.bf16.mxu1 %v1128_v0 }
  0xd8   : > { %1067 = vmatpush1.bf16.msra.mxu0 %v1066_v55 }
  0xd9   : > { %1131 = vmatpush1.bf16.msra.mxu1 %v1130_v3  ;;  %1132 = vmatprep.subr.bf16.mxu0 %v1489_v7 }
  0xdb   : > { %570 = vmatmul.mubr.f32.vlgmr.msra.gmra.mrb[0].mxu0 %v353_v62 }
  0xdc   : > { %641 = vmatmul.mubr.f32.vlgmr.msra.gmra.mrb[0].mxu1 %v353_v62  ;;  %1134 = vmatpush3.bf16.msra.mxu0 %v1133_v6 }
  0xdd   : > { %1135 = vmatprep.subr.bf16.mxu0 %v1489_v7  ;;  %1001 = vmatprep.mubr.msk.f32.mxu0 %vm1490_vm0, %v1491_v25 }
  0xe0   : > { %1137 = vmatpush3.bf16.msra.mxu0 %v1136_v10 }
  0xe1   : > { %1138 = vmatprep.subr.bf16.mxu0 %v1489_v7 }
  0xe4   : > { %1140 = vmatpush3.bf16.msra.mxu0 %v1139_v13 }
  0xe5   : > { %1141 = vmatprep.subr.bf16.mxu0 %v1489_v7 }
  0xe8   : > { %1143 = vmatpush3.bf16.msra.mxu0 %v1142_v16 }
  0xe9   : > { %1144 = vmatprep.subr.bf16.mxu0 %v1489_v7 }
  0xec   : > { %1146 = vmatpush3.bf16.msra.mxu0 %v1145_v19 }
  0xed   : > { %1147 = vmatprep.subr.bf16.mxu0 %v1489_v7 }
  0xf0   : > { %1149 = vmatpush3.bf16.msra.mxu0 %v1148_v22 }
  0xf1   : > { %1150 = vmatprep.subr.bf16.mxu0 %v1489_v7 }
  0xf4   : > { %1152 = vmatpush3.bf16.msra.mxu0 %v1151_v26 }
  0xf5   : > { %1153 = vmatprep.subr.bf16.mxu0 %v1489_v7 }
  0xf8   : > { %1155 = vmatpush3.bf16.msra.mxu0 %v1154_v29 }
 0x1ae   : > { %v571_v36 = vpop.f32.mrb[0].mxu0 }
 0x1af   : > { %v572_v38 = vadd.f32 %v571_v36, %v488_v35  ;;  %v573_v39 = vpop.f32.mrb[1].mxu0  ;;  %v642_v43 = vpop.f32.mrb[0].mxu1 }
 0x1b0   : > { %v574_v41 = vadd.f32 %v573_v39, %v492_v37  ;;  %v644_v44 = vpop.f32.mrb[1].mxu1  ;;  %v643_v56 = vadd.f32 %v642_v43, %v496_v53 }
 0x1b1   : > { %v943_v40 = vmul.f32 -1.442695, %v572_v38  ;;  %v645_v54 = vadd.f32 %v644_v44, %v500_v50 }
 0x1b2   : > { %v944_v42 = vmul.f32 -1.442695, %v574_v41 }
 0x1b3   : > { %1245 = vpow2.f32 %v943_v40 }
 0x1b4   : > { %1247 = vpow2.f32 %v944_v42 }
 0x1bd   : > { %v1246_v46 = vpop.eup %1245 }
 0x1be   : > { %v650_v47 = vadd.f32 1.0, %v1246_v46  ;;  %v1248_v51 = vpop.eup %1247 }
 0x1bf   : > { %v656_v52 = vadd.f32 1.0, %v1248_v51 }
 0x1c0   : > { %1249 = vrcp.f32 %v650_v47 }
 0x1c1   : > { %1251 = vrcp.f32 %v656_v52 }
 0x1ca   : > { %v1250_v55 = vpop.eup %1249 }
 0x1cb   : > { %v659_v57 = vmul.f32 %v1250_v55, %v645_v54  ;;  %v1252_v59 = vpop.eup %1251 }
 0x1cc   : > { %v662_v60 = vsub.f32 1.0, %v1252_v59  ;;  %v664_v63 = vmul.f32 %v1252_v59, %v1752_v45 }
 0x1cd   : > { %v660_v58 = vadd.f32 %v659_v57, %v643_v56 }
 0x1cf   : > { %1253 = vtanh.f32 %v660_v58 }
 0x1d9   : > { %v1254_v61 = vpop.eup %1253 }
 0x1da   : > { %v663_v62 = vmul.f32 %v1254_v61, %v662_v60 }
 0x1dc   : > { %v665_v0 = vadd.f32 %v664_v63, %v663_v62 }
 0x1de   : > { %666 = vst [vmem:[#allocation2] sm:$0xff] %v665_v0  ;;  %1002 = vmatmul.mubr.f32.vlgmr.msra.gmra.mrb[2].mxu0 %v665_v0  ;;  %667 = vst [vmem:[%s346_s11] sm:$0xff] %v665_v0 }
 0x1df   : > { %1382 = shalt.err (!%p1379_p9)
}
 0x1e0   : > { %s1383_s11 = scalar_lea.hbm %s1770_s23, 128  ;;  %s1387_s12 = scalar_lea.hbm %s1854_s7, 1024 }
 0x1e1   : > { %p1384_p11 = scmp.ne.s32.totalorder %s1770_s23, %s1383_s11  ;;  %p1388_p8 = scmp.lt.u32.totalorder %s1770_s23, %s1854_s7 }
 0x1e2   : > { %p1389_p3 = scmp.lt.u32.totalorder %s1387_s12, %s1383_s11  ;;  %p1391_p12 = scmp.lt.u32.totalorder %s1383_s11, %s1770_s23 }
 0x1e3   : > { %p1385_p13 = pnand %p1384_p11, %p1679_p5 }
 0x1e4   : > { %p1390_p7 = por %p1389_p3, %p1388_p8 }
 0x1e5   : > { %p1386_p6 = pneg %p1385_p13 }
 0x1e6   : > { %p1392_p2 = por %p1391_p12, %p1390_p7 }
 0x1e8   : > { %p1393_p1 = pnand %p1392_p2, %p1386_p6 }
 0x1ea   : > { %1396 = shalt.err (!%p1393_p1)
}
 0x1eb   : > { %1171 = dma.vmem_to_hbm [thread:$0]  (%p1679_p5), %s795_s14, 128, %s1770_s23, %s768_s15   ;;  %v945_v45 = vld [vmem:[%s1852_s5] ss:$0 sm:$0xff] }
 0x1ec   : > { %s781_s16 = sshll.u32 %s339_s9, 4  ;;  %s1802_s12 = scalar_lea.hbm %s1853_s6, %s948_s20  ;;  %s1804_s16 = int_to_ptr.vmem [resolvable:$true] %s781_s16 }
 0x1ed   : > { %s763_s23 = scalar_lea.sflag [#allocation5], %s1730_s19  ;;  %s1397_s14 = scalar_lea.vmem %s1804_s16, 128 }
 0x1ee   : > { %p1398_p4 = scmp.ne.s32.totalorder %s1804_s16, %s1397_s14  ;;  %s1493_s15 = smov [#allocation11]  }
 0x1ef   : > { %s1401_s28 = sshll.u32 %s1493_s15, 4  ;;  %s1402_s28 = int_to_ptr.vmem [resolvable:$false] %s1401_s28 }
 0x1f0   : > { %p1399_p0 = pnand %p1398_p4, %p1679_p5  ;;  %s1403_s29 = scalar_lea.vmem %s1402_s28, 256 }
 0x1f1   : > { %p1404_p9 = scmp.lt.s32.totalorder %s1804_s16, %s1402_s28  ;;  %p1405_p11 = scmp.lt.s32.totalorder %s1403_s29, %s1397_s14 }
 0x1f2   : > { %p1400_p10 = pneg %p1399_p0 }
 0x1f3   : > { %p1406_p13 = por %p1405_p11, %p1404_p9 }
 0x1f5   : > { %p1407_p6 = pnand %p1406_p13, %p1400_p10 }
 0x2b1   : > { %v757_v1 = vpop.f32.mrb[2].mxu0 }
 0x2b2   : > { %v758_v2 = vadd.f32 %v945_v45, %v757_v1  ;;  %v1003_v3 = vpop.f32.mrb[3].mxu0 }
 0x2b4   : > { %761 = vst [vmem:[%s339_s9] sm:$0xff] %v758_v2 }
 0x2b5   : > { %1410 = shalt.err (!%p1407_p6)
}
 0x2b6   : > { %s1411_s19 = scalar_lea.hbm %s1802_s12, 128  ;;  %s1415_s20 = scalar_lea.hbm %s1853_s6, 1024 }
 0x2b7   : > { %p1412_p8 = scmp.ne.s32.totalorder %s1802_s12, %s1411_s19  ;;  %p1416_p12 = scmp.lt.u32.totalorder %s1802_s12, %s1853_s6 }
 0x2b8   : > { %p1417_p2 = scmp.lt.u32.totalorder %s1415_s20, %s1411_s19  ;;  %p1419_p4 = scmp.lt.u32.totalorder %s1411_s19, %s1802_s12 }
 0x2b9   : > { %p1413_p3 = pnand %p1412_p8, %p1679_p5 }
 0x2ba   : > { %p1418_p1 = por %p1417_p2, %p1416_p12 }
 0x2bb   : > { %p1414_p7 = pneg %p1413_p3 }
 0x2bc   : > { %p1420_p0 = por %p1419_p4, %p1418_p1 }
 0x2be   : > { %p1421_p10 = pnand %p1420_p0, %p1414_p7 }
 0x2c0   : > { %1424 = shalt.err (!%p1421_p10)
}
 0x2c1   : > { %1170 = dma.vmem_to_hbm [thread:$0]  (%p1679_p5), %s1804_s16, 128, %s1802_s12, %s763_s23  }
 0x2c2 PF: > { %s1877_s30 = sld [smem:[#allocation20_spill]]  ;;  %p1202_p9 = scmp.ge.s32.totalorder %s1479_s27, 2 }
 0x2c3   : > { %s806_s11 = sand.u32 1, %s1467_s24  }
 0x2c4   : > { %s807_s21 = scalar_lea.sflag [#allocation5], %s806_s11 }
 0x2c8   : > { %p1878_p11 = scmp.ne.s32.totalorder %s1877_s30, 0 }
 0x2ca   : > { %p1189_p13 = pnand %p1202_p9, %p1878_p11 }
 0x2cc   : > { %1458 = dma.done.wait (!%p1189_p13), %s807_s21, 128  }
 0x2cd   : > { %1460 = vsyncadd (!%p1189_p13), %s807_s21, 4294967168  ;;  %s816_s14 = scalar_lea.sflag [#allocation13], %s806_s11 }
 0x2ce   : > { %1462 = dma.done.wait (!%p1189_p13), %s816_s14, 128  }
 0x2cf   : > { %1464 = vsyncadd (!%p1189_p13), %s816_s14, 4294967168  ;;  %p26_p5 = scmp.ge.s32.totalorder %s1665_s8, 10   ;;  %s1879_s24 = smov %s1471_s25 }
 0x2d0   : > { %s1880_s25 = smov %s1475_s26  ;;  %s1881_s26 = smov %s1675_s17 }
 0x2d1   : > { %s1882_s27 = smov %s1665_s8  ;;  %28 = sbr.rel (!%p26_p5) target bundleno = 9 (0x9), region = 123 }
 0x2d8   :  { %821 = vsyncpa [#allocation4], 1 }
 0x2d9   :  { %823 = vsyncpa [#allocation4 + $0x1], 1 }
 0x2da   :  { %824 = vsyncpa [#allocation7], 1 }
 0x2db   :  { %826 = vsyncpa [#allocation7 + $0x1], 1 }
 0x2dc   :  { %827 = vsyncpa [#allocation10], 1 }
 0x2dd   :  { %828 = vsyncpa [#allocation5], 1 }
 0x2de   :  { %830 = vsyncpa [#allocation5 + $0x1], 1 }
 0x2df   :  { %831 = vsyncpa [#allocation13], 1 }
 0x2e0   :  { %833 = vsyncpa [#allocation13 + $0x1], 1 }

</bundles_post_ra>
